<compile_context>
chip_gen: v6e
topology: v6e:2x2x1
jax: 0.10.0
libtpu: 0.0.40
codegen_flags: <defaults>
</compile_context>

<pallas_src>
import functools

import jax
import jax.numpy as jnp
from jax.experimental import pallas as pl
from jax.experimental.pallas import tpu as pltpu


# -----------------------------------------------------------------------------
# Pallas kernel: one node-row tile of the SLSTM cell
# -----------------------------------------------------------------------------
def slstm_kernel(hx_ref, c_ref, degb_ref, adj_ref, hall_ref, wr_ref, whxu_ref, wn_ref,
                 bias_ref, new_h_ref, new_c_ref):
    f32 = jnp.float32
    TN, H = c_ref.shape              # node-row tile, hidden size
    R = wr_ref.shape[0]              # relation count (static)
    md = wr_ref.dtype                # MXU operand dtype (bf16 default, f32 exact path)

    # ---- RGCN message passing ------------------------------------------------
    # hn = sum_r (adj_r @ h) @ Wr^T  +  deg_bias   (deg_bias = sum_r deg_r * br_r, precomputed)
    hall = hall_ref[...]                             # (N, H), resident, MXU dtype
    hn = degb_ref[...].astype(f32)                   # (TN, H) accumulator init (f32)
    for r in range(R):                               # static unroll over the small relation count
        p_r = jnp.dot(adj_ref[r], hall, preferred_element_type=f32)          # (TN, H)
        hn = hn + jnp.dot(p_r.astype(md), wr_ref[r], preferred_element_type=f32)

    # ---- gates = [h|x] @ [Wh^T;U^T]  +  hn @ Wn^T  +  (g V^T + b_V) ----------
    gates = jnp.dot(hx_ref[...], whxu_ref[...], preferred_element_type=f32)
    gates = gates + jnp.dot(hn.astype(md), wn_ref[...], preferred_element_type=f32)
    gates = gates + bias_ref[...].astype(f32)        # VPU add, (1, 4H) broadcast

    # ---- activations: one sigmoid slab for i|f|o, one tanh for u (single EUP pipe) ----
    H3 = 3 * H
    ifo = jax.nn.sigmoid(gates[:, :H3])
    u = jnp.tanh(gates[:, H3:])
    i = ifo[:, 0:H]
    f = ifo[:, H:2 * H]
    o = ifo[:, 2 * H:H3]

    # ---- elementwise update in f32 (carry state c stays exact across steps) ----
    # NOTE: for production pick H as a multiple of 128 so these stores are unmasked / lane-dense.
    new_c = f * c_ref[...].astype(f32) + i * u
    new_h = o * jnp.tanh(new_c)
    new_c_ref[...] = new_c.astype(new_c_ref.dtype)
    new_h_ref[...] = new_h.astype(new_h_ref.dtype)


# -----------------------------------------------------------------------------
# Device-adaptive tiling / VMEM budgeting
# -----------------------------------------------------------------------------
def _vmem_capacity_bytes():
    try:
        return int(pltpu.get_tpu_info().vmem_capacity_bytes)
    except Exception:
        return 64 * 1024 * 1024          # conservative fallback (v7x per-TC VMEM)


def _plan_tiling(N, H, In, R, md_bytes, out_bytes, tile_nodes):
    cap = _vmem_capacity_bytes()

    # Resident (grid-invariant) blocks: full-graph h, stacked weights, folded bias.
    resident = (N * H * md_bytes                       # h (full graph)
                + (H + In) * 4 * H * md_bytes          # [Wh^T;U^T]
                + H * 4 * H * md_bytes                 # Wn^T
                + R * H * H * md_bytes                 # Wr stack
                + 4 * H * 4)                           # folded g-bias (f32)

    def stream_bytes(tn):                              # double-buffered per-tile streams
        return 2 * (R * tn * N * md_bytes              # adjacency row block (dominant)
                    + tn * (H + In) * md_bytes         # [h|x] tile
                    + tn * H * 4                       # c tile (f32)
                    + tn * H * 4                       # deg_bias tile (f32)
                    + 2 * tn * H * out_bytes)          # new_h / new_c tiles

    if tile_nodes is None:
        budget = max(int(0.55 * min(cap, 128 * 1024 * 1024)) - 2 * resident, 4 * 1024 * 1024)
        cands = [d for d in range(8, N + 1, 8) if N % d == 0]
        if N not in cands:
            cands.append(N)
        fitting = [d for d in cands if stream_bytes(d) <= budget] or [min(cands)]
        pipelined = [d for d in fitting if N // d >= 8]      # >= 8 tiles: pipeline + 2 TCs on v7x
        tile_nodes = max(pipelined or fitting)

    need = 2 * resident + stream_bytes(tile_nodes) + 8 * 1024 * 1024
    vmem_limit = int(min(max(need, 48 * 1024 * 1024), 0.85 * cap))
    vmem_limit = (vmem_limit // (1024 * 1024)) * 1024 * 1024
    return tile_nodes, vmem_limit


# -----------------------------------------------------------------------------
# Wrapper: node-row-tiled pallas_call; weights / folded bias / full-graph h resident
# -----------------------------------------------------------------------------
def slstm_cell(x, h, c, g, adjs, params, *, matmul_dtype=jnp.bfloat16, tile_nodes=None):
    N, H = h.shape
    In = x.shape[-1]
    R = adjs.shape[0]
    f32 = jnp.float32
    md = matmul_dtype
    md_bytes = jnp.dtype(md).itemsize
    out_bytes = max(jnp.dtype(h.dtype).itemsize, jnp.dtype(c.dtype).itemsize)

    TN, vmem_limit = _plan_tiling(N, H, In, R, md_bytes, out_bytes, tile_nodes)
    # TODO(synk): pad the node dimension when N % TN != 0 for production graph sizes.
    assert N % TN == 0, "node count must be a multiple of tile_nodes"
    grid = (N // TN,)

    # ---- one-time operand packing (plain XLA ops, outside the kernel) ----
    # (1) Fold the global-node term g @ V^T + b_V into a single (1, 4H) f32 bias row.
    bias_g = (g.reshape(1, H).astype(f32) @ params["vT"].astype(f32)
              + params["vb"].astype(f32))
    # (2) Stack the h/x gate weights so those two matmuls become one MXU op; Wn stays separate
    #     so no in-kernel concat of hn is needed.
    w_hxu = jnp.concatenate([params["whT"], params["uT"]], axis=0).astype(md)   # (H+In, 4H)
    w_n = params["wnT"].astype(md)                                              # (H, 4H)
    wr = params["wrT"].astype(md)                                               # (R, H, H)
    # (3) Per-relation RGCN bias folded through node degrees (lane-dense (N, H), exact algebra):
    #     adj_r @ (h Wr^T + br) == (adj_r @ h) Wr^T + deg_r * br ,  deg_bias = sum_r deg_r (x) br_r
    deg = adjs.astype(f32).sum(axis=-1)                                         # (R, N)
    deg_bias = deg.T @ params["br"].reshape(R, H).astype(f32)                   # (N, H), f32
    # (4) Row-tiled [h|x] operand and resident full-graph h, both in MXU dtype; c stays f32.
    hx = jnp.concatenate([h, x], axis=-1).astype(md)                            # (N, H+In)
    h_all = h.astype(md)                                                        # (N, H)
    adjs_md = adjs.astype(md)                    # 0/1 entries are exact in bf16

    new_h, new_c = pl.pallas_call(
        slstm_kernel,
        grid=grid,
        out_shape=(jax.ShapeDtypeStruct((N, H), h.dtype),
                   jax.ShapeDtypeStruct((N, H), c.dtype)),
        in_specs=[
            pl.BlockSpec((TN, H + In), lambda i: (i, 0)),        # [h|x] row tile
            pl.BlockSpec((TN, H), lambda i: (i, 0)),             # c row tile (f32)
            pl.BlockSpec((TN, H), lambda i: (i, 0)),             # deg_bias row tile (f32)
            pl.BlockSpec((R, TN, N), lambda i: (0, i, 0)),       # adjacency row block, all relations
            pl.BlockSpec((N, H), lambda i: (0, 0)),              # full-graph h, resident
            pl.BlockSpec((R, H, H), lambda i: (0, 0, 0)),        # stacked RGCN weights, resident
            pl.BlockSpec((H + In, 4 * H), lambda i: (0, 0)),     # [Wh^T;U^T], resident
            pl.BlockSpec((H, 4 * H), lambda i: (0, 0)),          # Wn^T, resident
            pl.BlockSpec((1, 4 * H), lambda i: (0, 0)),          # folded g-bias, resident (f32)
        ],
        out_specs=(pl.BlockSpec((TN, H), lambda i: (i, 0)),
                   pl.BlockSpec((TN, H), lambda i: (i, 0))),
        compiler_params=pltpu.CompilerParams(
            dimension_semantics=("parallel",),       # v7x: row tiles split across both TCs
            vmem_limit_bytes=vmem_limit),            # derived per generation, not hard-coded
    )(hx, c, deg_bias, adjs_md, h_all, wr, w_hxu, w_n, bias_g)
    return new_h, new_c


# -----------------------------------------------------------------------------
# Pure-JAX reference (mirrors the PyTorch forward, unfused math)
# -----------------------------------------------------------------------------
def slstm_ref(x, h, c, g, adjs, params):
    R = adjs.shape[0]
    hn = jnp.zeros_like(h)
    for r in range(R):
        hn = hn + adjs[r] @ (h @ params["wrT"][r] + params["br"][r])
    gates = (h @ params["whT"] + x @ params["uT"] + hn @ params["wnT"]
             + g.reshape(1, -1) @ params["vT"] + params["vb"])
    H = h.shape[-1]
    i, f, o, u = (gates[:, k * H:(k + 1) * H] for k in range(4))
    new_c = jax.nn.sigmoid(f) * c + jax.nn.sigmoid(i) * jnp.tanh(u)
    new_h = jax.nn.sigmoid(o) * jnp.tanh(new_c)
    return new_h, new_c


# -----------------------------------------------------------------------------
# Deterministic parameter / input construction
# -----------------------------------------------------------------------------
def init_params(key, input_size, hidden_size, relation_num):
    ks = jax.random.split(key, 7)
    H, In, R = hidden_size, input_size, relation_num
    s_h = 1.0 / jnp.sqrt(H)
    s_in = 1.0 / jnp.sqrt(In)
    # Weights stored pre-transposed: y = x @ W^T  ->  pass W^T directly.
    return {
        "whT": jax.random.uniform(ks[0], (H, 4 * H), jnp.float32, -s_h, s_h),
        "wnT": jax.random.uniform(ks[1], (H, 4 * H), jnp.float32, -s_h, s_h),
        "uT":  jax.random.uniform(ks[2], (In, 4 * H), jnp.float32, -s_in, s_in),
        "vT":  jax.random.uniform(ks[3], (H, 4 * H), jnp.float32, -s_h, s_h),
        "vb":  jax.random.uniform(ks[4], (1, 4 * H), jnp.float32, -s_h, s_h),
        # RGCN per-relation linears (H -> H), biases stored as (R, 1, H)
        "wrT": jax.random.uniform(ks[5], (R, H, H), jnp.float32, -s_h, s_h),
        "br":  jax.random.uniform(ks[6], (R, 1, H), jnp.float32, -s_h, s_h),
    }


if __name__ == "__main__":
    num_nodes = 8
    input_size = 16
    hidden_size = 32
    relation_num = 3

    key = jax.random.PRNGKey(0)
    k_x, k_h, k_c, k_g, k_a, k_p = jax.random.split(key, 6)

    x = jax.random.normal(k_x, (num_nodes, input_size), jnp.float32)
    h = jax.random.normal(k_h, (num_nodes, hidden_size), jnp.float32)
    c = jax.random.normal(k_c, (num_nodes, hidden_size), jnp.float32)
    g = jax.random.normal(k_g, (hidden_size,), jnp.float32)
    adjs = (jax.random.uniform(k_a, (relation_num, num_nodes, num_nodes))
            > 0.5).astype(jnp.float32)

    params = init_params(k_p, input_size, hidden_size, relation_num)

    ref_h, ref_c = slstm_ref(x, h, c, g, adjs, params)

    # Exact f32 path: strict check against the unfused reference (fusion only reassociates sums).
    fh, fc = jax.jit(functools.partial(slstm_cell, matmul_dtype=jnp.float32))(
        x, h, c, g, adjs, params)
    jax.block_until_ready((fh, fc))
    assert jnp.allclose(fh, ref_h, atol=1e-4, rtol=1e-4)
    assert jnp.allclose(fc, ref_c, atol=1e-4, rtol=1e-4)

    # Default bf16 MXU-operand path (perf mode): f32 accumulation + f32 epilogue, loose check.
    bh, bc = jax.jit(slstm_cell)(x, h, c, g, adjs, params)
    jax.block_until_ready((bh, bc))
    assert bool(jnp.all(jnp.isfinite(bh))) and bool(jnp.all(jnp.isfinite(bc)))
    assert float(jnp.max(jnp.abs(bh - ref_h))) < 0.25
    assert float(jnp.max(jnp.abs(bc - ref_c))) < 0.5

    print("KERNEL_OK")
</pallas_src>

<mosaic_0001>
module attributes {stable_mosaic.version = 11 : i64} {
  func.func @slstm_kernel(%arg0: i32, %arg1: memref<8x48xf32, #tpu.memory_space<vmem>>, %arg2: memref<8x32xf32, #tpu.memory_space<vmem>>, %arg3: memref<8x32xf32, #tpu.memory_space<vmem>>, %arg4: memref<3x8x8xf32, #tpu.memory_space<vmem>>, %arg5: memref<8x32xf32, #tpu.memory_space<vmem>>, %arg6: memref<3x32x32xf32, #tpu.memory_space<vmem>>, %arg7: memref<48x128xf32, #tpu.memory_space<vmem>>, %arg8: memref<32x128xf32, #tpu.memory_space<vmem>>, %arg9: memref<1x128xf32, #tpu.memory_space<vmem>>, %arg10: memref<8x32xf32, #tpu.memory_space<vmem>>, %arg11: memref<8x32xf32, #tpu.memory_space<vmem>>) attributes {dimension_semantics = [#tpu.dimension_semantics<parallel>], iteration_bounds = array<i64: 1>, scalar_prefetch = 0 : i64, scratch_operands = 0 : i64, tpu.core_type = #tpu.core_type<tc>, window_params = [{transform_indices = @transform_0, window_bounds = array<i64: 8, 48>}, {transform_indices = @transform_1, window_bounds = array<i64: 8, 32>}, {transform_indices = @transform_2, window_bounds = array<i64: 8, 32>}, {transform_indices = @transform_3, window_bounds = array<i64: 3, 8, 8>}, {pipeline_mode = #tpu.pipeline_mode<synchronous>, transform_indices = @transform_4, window_bounds = array<i64: 8, 32>}, {pipeline_mode = #tpu.pipeline_mode<synchronous>, transform_indices = @transform_5, window_bounds = array<i64: 3, 32, 32>}, {pipeline_mode = #tpu.pipeline_mode<synchronous>, transform_indices = @transform_6, window_bounds = array<i64: 48, 128>}, {pipeline_mode = #tpu.pipeline_mode<synchronous>, transform_indices = @transform_7, window_bounds = array<i64: 32, 128>}, {pipeline_mode = #tpu.pipeline_mode<synchronous>, transform_indices = @transform_8, window_bounds = array<i64: 1, 128>}, {transform_indices = @transform_9, window_bounds = array<i64: 8, 32>}, {transform_indices = @transform_10, window_bounds = array<i64: 8, 32>}]} {
    %c0 = arith.constant 0 : index
    %c0_0 = arith.constant 0 : index
    %0 = vector.load %arg5[%c0, %c0_0] : memref<8x32xf32, #tpu.memory_space<vmem>>, vector<8x32xf32>
    %c0_1 = arith.constant 0 : index
    %c0_2 = arith.constant 0 : index
    %1 = vector.load %arg3[%c0_1, %c0_2] : memref<8x32xf32, #tpu.memory_space<vmem>>, vector<8x32xf32>
    %c0_3 = arith.constant 0 : index
    %c0_4 = arith.constant 0 : index
    %c0_5 = arith.constant 0 : index
    %2 = vector.load %arg4[%c0_3, %c0_4, %c0_5] : memref<3x8x8xf32, #tpu.memory_space<vmem>>, vector<1x8x8xf32>
    %3 = vector.shape_cast %2 : vector<1x8x8xf32> to vector<8x8xf32>
    %cst = arith.constant dense<0.000000e+00> : vector<8x32xf32>
    %4 = tpu.matmul %3, %0, %cst {dimension_numbers = #tpu.dot_dimension_numbers<[1], [0], [0], [1], [0, 0, 1, 1], [], []>} : vector<8x8xf32>, vector<8x32xf32>, vector<8x32xf32> -> vector<8x32xf32>
    %c0_6 = arith.constant 0 : index
    %c0_7 = arith.constant 0 : index
    %c0_8 = arith.constant 0 : index
    %5 = vector.load %arg6[%c0_6, %c0_7, %c0_8] : memref<3x32x32xf32, #tpu.memory_space<vmem>>, vector<1x32x32xf32>
    %6 = vector.shape_cast %5 : vector<1x32x32xf32> to vector<32x32xf32>
    %cst_9 = arith.constant dense<0.000000e+00> : vector<8x32xf32>
    %7 = tpu.matmul %4, %6, %cst_9 {dimension_numbers = #tpu.dot_dimension_numbers<[1], [0], [0], [1], [0, 0, 1, 1], [], []>} : vector<8x32xf32>, vector<32x32xf32>, vector<8x32xf32> -> vector<8x32xf32>
    %8 = arith.addf %1, %7 : vector<8x32xf32>
    %c1 = arith.constant 1 : index
    %c0_10 = arith.constant 0 : index
    %c0_11 = arith.constant 0 : index
    %9 = vector.load %arg4[%c1, %c0_10, %c0_11] : memref<3x8x8xf32, #tpu.memory_space<vmem>>, vector<1x8x8xf32>
    %10 = vector.shape_cast %9 : vector<1x8x8xf32> to vector<8x8xf32>
    %cst_12 = arith.constant dense<0.000000e+00> : vector<8x32xf32>
    %11 = tpu.matmul %10, %0, %cst_12 {dimension_numbers = #tpu.dot_dimension_numbers<[1], [0], [0], [1], [0, 0, 1, 1], [], []>} : vector<8x8xf32>, vector<8x32xf32>, vector<8x32xf32> -> vector<8x32xf32>
    %c1_13 = arith.constant 1 : index
    %c0_14 = arith.constant 0 : index
    %c0_15 = arith.constant 0 : index
    %12 = vector.load %arg6[%c1_13, %c0_14, %c0_15] : memref<3x32x32xf32, #tpu.memory_space<vmem>>, vector<1x32x32xf32>
    %13 = vector.shape_cast %12 : vector<1x32x32xf32> to vector<32x32xf32>
    %cst_16 = arith.constant dense<0.000000e+00> : vector<8x32xf32>
    %14 = tpu.matmul %11, %13, %cst_16 {dimension_numbers = #tpu.dot_dimension_numbers<[1], [0], [0], [1], [0, 0, 1, 1], [], []>} : vector<8x32xf32>, vector<32x32xf32>, vector<8x32xf32> -> vector<8x32xf32>
    %15 = arith.addf %8, %14 : vector<8x32xf32>
    %c2 = arith.constant 2 : index
    %c0_17 = arith.constant 0 : index
    %c0_18 = arith.constant 0 : index
    %16 = vector.load %arg4[%c2, %c0_17, %c0_18] : memref<3x8x8xf32, #tpu.memory_space<vmem>>, vector<1x8x8xf32>
    %17 = vector.shape_cast %16 : vector<1x8x8xf32> to vector<8x8xf32>
    %cst_19 = arith.constant dense<0.000000e+00> : vector<8x32xf32>
    %18 = tpu.matmul %17, %0, %cst_19 {dimension_numbers = #tpu.dot_dimension_numbers<[1], [0], [0], [1], [0, 0, 1, 1], [], []>} : vector<8x8xf32>, vector<8x32xf32>, vector<8x32xf32> -> vector<8x32xf32>
    %c2_20 = arith.constant 2 : index
    %c0_21 = arith.constant 0 : index
    %c0_22 = arith.constant 0 : index
    %19 = vector.load %arg6[%c2_20, %c0_21, %c0_22] : memref<3x32x32xf32, #tpu.memory_space<vmem>>, vector<1x32x32xf32>
    %20 = vector.shape_cast %19 : vector<1x32x32xf32> to vector<32x32xf32>
    %cst_23 = arith.constant dense<0.000000e+00> : vector<8x32xf32>
    %21 = tpu.matmul %18, %20, %cst_23 {dimension_numbers = #tpu.dot_dimension_numbers<[1], [0], [0], [1], [0, 0, 1, 1], [], []>} : vector<8x32xf32>, vector<32x32xf32>, vector<8x32xf32> -> vector<8x32xf32>
    %22 = arith.addf %15, %21 : vector<8x32xf32>
    %c0_24 = arith.constant 0 : index
    %c0_25 = arith.constant 0 : index
    %23 = vector.load %arg1[%c0_24, %c0_25] : memref<8x48xf32, #tpu.memory_space<vmem>>, vector<8x48xf32>
    %c0_26 = arith.constant 0 : index
    %c0_27 = arith.constant 0 : index
    %24 = vector.load %arg7[%c0_26, %c0_27] : memref<48x128xf32, #tpu.memory_space<vmem>>, vector<48x128xf32>
    %cst_28 = arith.constant dense<0.000000e+00> : vector<8x128xf32>
    %25 = tpu.matmul %23, %24, %cst_28 {dimension_numbers = #tpu.dot_dimension_numbers<[1], [0], [0], [1], [0, 0, 1, 1], [], []>} : vector<8x48xf32>, vector<48x128xf32>, vector<8x128xf32> -> vector<8x128xf32>
    %c0_29 = arith.constant 0 : index
    %c0_30 = arith.constant 0 : index
    %26 = vector.load %arg8[%c0_29, %c0_30] : memref<32x128xf32, #tpu.memory_space<vmem>>, vector<32x128xf32>
    %cst_31 = arith.constant dense<0.000000e+00> : vector<8x128xf32>
    %27 = tpu.matmul %22, %26, %cst_31 {dimension_numbers = #tpu.dot_dimension_numbers<[1], [0], [0], [1], [0, 0, 1, 1], [], []>} : vector<8x32xf32>, vector<32x128xf32>, vector<8x128xf32> -> vector<8x128xf32>
    %28 = arith.addf %25, %27 : vector<8x128xf32>
    %c0_32 = arith.constant 0 : index
    %c0_33 = arith.constant 0 : index
    %29 = vector.load %arg9[%c0_32, %c0_33] : memref<1x128xf32, #tpu.memory_space<vmem>>, vector<1x128xf32>
    %30 = vector.broadcast %29 : vector<1x128xf32> to vector<8x128xf32>
    %31 = arith.addf %28, %30 : vector<8x128xf32>
    %32 = vector.extract_strided_slice %31 {offsets = [0, 0], sizes = [8, 96], strides = [1, 1]} : vector<8x128xf32> to vector<8x96xf32>
    %33 = arith.negf %32 : vector<8x96xf32>
    %34 = math.exp %33 : vector<8x96xf32>
    %cst_34 = arith.constant 1.000000e+00 : f32
    %35 = vector.broadcast %cst_34 : f32 to vector<8x96xf32>
    %36 = arith.addf %35, %34 : vector<8x96xf32>
    %37 = arith.divf %35, %36 : vector<8x96xf32>
    %38 = vector.extract_strided_slice %31 {offsets = [0, 96], sizes = [8, 32], strides = [1, 1]} : vector<8x128xf32> to vector<8x32xf32>
    %39 = math.tanh %38 : vector<8x32xf32>
    %40 = vector.extract_strided_slice %37 {offsets = [0, 0], sizes = [8, 32], strides = [1, 1]} : vector<8x96xf32> to vector<8x32xf32>
    %41 = vector.extract_strided_slice %37 {offsets = [0, 32], sizes = [8, 32], strides = [1, 1]} : vector<8x96xf32> to vector<8x32xf32>
    %42 = vector.extract_strided_slice %37 {offsets = [0, 64], sizes = [8, 32], strides = [1, 1]} : vector<8x96xf32> to vector<8x32xf32>
    %c0_35 = arith.constant 0 : index
    %c0_36 = arith.constant 0 : index
    %43 = vector.load %arg2[%c0_35, %c0_36] : memref<8x32xf32, #tpu.memory_space<vmem>>, vector<8x32xf32>
    %44 = arith.mulf %41, %43 : vector<8x32xf32>
    %45 = arith.mulf %40, %39 : vector<8x32xf32>
    %46 = arith.addf %44, %45 : vector<8x32xf32>
    %47 = math.tanh %46 : vector<8x32xf32>
    %48 = arith.mulf %42, %47 : vector<8x32xf32>
    %c0_37 = arith.constant 0 : index
    %c0_38 = arith.constant 0 : index
    %49 = vector.load %arg11[%c0_37, %c0_38] : memref<8x32xf32, #tpu.memory_space<vmem>>, vector<8x32xf32>
    tpu.vector_store %arg11[%c0_37, %c0_38], %46 {strides = array<i32>} : memref<8x32xf32, #tpu.memory_space<vmem>>, vector<8x32xf32>,
    %c0_39 = arith.constant 0 : index
    %c0_40 = arith.constant 0 : index
    %50 = vector.load %arg10[%c0_39, %c0_40] : memref<8x32xf32, #tpu.memory_space<vmem>>, vector<8x32xf32>
    tpu.vector_store %arg10[%c0_39, %c0_40], %48 {strides = array<i32>} : memref<8x32xf32, #tpu.memory_space<vmem>>, vector<8x32xf32>,
    return
  }
  func.func @transform_0(%arg0: i32) -> (i32, i32) {
    %c0_i32 = arith.constant 0 : i32
    %c0_i32_0 = arith.constant 0 : i32
    return %arg0, %c0_i32 : i32, i32
  }
  func.func @transform_1(%arg0: i32) -> (i32, i32) {
    %c0_i32 = arith.constant 0 : i32
    %c0_i32_0 = arith.constant 0 : i32
    return %arg0, %c0_i32 : i32, i32
  }
  func.func @transform_2(%arg0: i32) -> (i32, i32) {
    %c0_i32 = arith.constant 0 : i32
    %c0_i32_0 = arith.constant 0 : i32
    return %arg0, %c0_i32 : i32, i32
  }
  func.func @transform_3(%arg0: i32) -> (i32, i32, i32) {
    %c0_i32 = arith.constant 0 : i32
    %c0_i32_0 = arith.constant 0 : i32
    %c0_i32_1 = arith.constant 0 : i32
    return %c0_i32, %arg0, %c0_i32_0 : i32, i32, i32
  }
  func.func @transform_4(%arg0: i32) -> (i32, i32) {
    %c0_i32 = arith.constant 0 : i32
    %c0_i32_0 = arith.constant 0 : i32
    %c0_i32_1 = arith.constant 0 : i32
    return %c0_i32, %c0_i32_0 : i32, i32
  }
  func.func @transform_5(%arg0: i32) -> (i32, i32, i32) {
    %c0_i32 = arith.constant 0 : i32
    %c0_i32_0 = arith.constant 0 : i32
    %c0_i32_1 = arith.constant 0 : i32
    %c0_i32_2 = arith.constant 0 : i32
    return %c0_i32, %c0_i32_0, %c0_i32_1 : i32, i32, i32
  }
  func.func @transform_6(%arg0: i32) -> (i32, i32) {
    %c0_i32 = arith.constant 0 : i32
    %c0_i32_0 = arith.constant 0 : i32
    %c0_i32_1 = arith.constant 0 : i32
    return %c0_i32, %c0_i32_0 : i32, i32
  }
  func.func @transform_7(%arg0: i32) -> (i32, i32) {
    %c0_i32 = arith.constant 0 : i32
    %c0_i32_0 = arith.constant 0 : i32
    %c0_i32_1 = arith.constant 0 : i32
    return %c0_i32, %c0_i32_0 : i32, i32
  }
  func.func @transform_8(%arg0: i32) -> (i32, i32) {
    %c0_i32 = arith.constant 0 : i32
    %c0_i32_0 = arith.constant 0 : i32
    %c0_i32_1 = arith.constant 0 : i32
    return %c0_i32, %c0_i32_0 : i32, i32
  }
  func.func @transform_9(%arg0: i32) -> (i32, i32) {
    %c0_i32 = arith.constant 0 : i32
    %c0_i32_0 = arith.constant 0 : i32
    return %arg0, %c0_i32 : i32, i32
  }
  func.func @transform_10(%arg0: i32) -> (i32, i32) {
    %c0_i32 = arith.constant 0 : i32
    %c0_i32_0 = arith.constant 0 : i32
    return %arg0, %c0_i32 : i32, i32
  }
}

</mosaic_0001>

<bundles_post_ra>
// kernel: slstm_cell.1
= control target key start
LH: loop header
LB: loop body
LE: loop exit
PB: predicated region body
PF: predicated region fallthrough
CT: control target
= control target key end

     0   :  { %16 = vsyncpa [#allocation3], 0  ;;  %vm39_vm0 = vcmask 64512   ;;  %v919_v2 = vmov 0.0   ;;  %vm920_vm1 = vmmov 0   ;;  %s1127_s0 = inlined_call_operand.vmem [shape: f32[8,48], index: 0, kind: input, shape index: {}]   ;;  %s1128_s1 = inlined_call_operand.vmem [shape: f32[8,32], index: 1, kind: input, shape index: {}]   ;;  %s1129_s2 = inlined_call_operand.vmem [shape: f32[8,32], index: 2, kind: input, shape index: {}]   ;;  %s1130_s3 = inlined_call_operand.vmem [shape: f32[3,8,8], index: 3, kind: input, shape index: {}]   ;;  %s1131_s4 = inlined_call_operand.vmem [shape: f32[8,32], index: 4, kind: input, shape index: {}]   ;;  %s1132_s5 = inlined_call_operand.vmem [shape: f32[3,32,32], index: 5, kind: input, shape index: {}]   ;;  %s1133_s6 = inlined_call_operand.vmem [shape: f32[48,128], index: 6, kind: input, shape index: {}]   ;;  %s1134_s7 = inlined_call_operand.vmem [shape: f32[32,128], index: 7, kind: input, shape index: {}]   ;;  %s1135_s8 = inlined_call_operand.vmem [shape: f32[1,128], index: 8, kind: input, shape index: {}]   ;;  %s1136_s9 = inlined_call_operand.hbm [shape: f32[8,32], index: 9, kind: output, shape index: {0}]   ;;  %s1137_s10 = inlined_call_operand.hbm [shape: f32[8,32], index: 10, kind: output, shape index: {1}]  }
   0x1   :  { %v36_v0 = vld [vmem:[%s1131_s4] sm:$0xff]  ;;  %786 = vmatprep.subr.mxu0 %v919_v2  ;;  %788 = vmatprep.mubr.msk.f32.mxu0 %vm920_vm1, %v919_v2  ;;  %v116_v3 = vld [vmem:[%s1132_s5 + $0x18] sm:$0xff] }
   0x2   :  { %v38_v1 = vld [vmem:[%s1130_s3] sm:$0xff]  ;;  %787 = vmatpush3.msra.mxu0 %v36_v0  ;;  %791 = vmatprep.subr.mxu1 %v919_v2 }
   0x3   :  { %17 = vsyncpa [#allocation5], 0  ;;  %789 = vmatmul.mubr.msk.f32.vlgmr.msra.gmra.mxu0 %vm39_vm0, %v38_v1  ;;  %802 = vmatprep.subr.mxu0 %v919_v2  ;;  %v735_v4 = vld [vmem:[%s1130_s3 + $0x8] sm:$0xff]  ;;  %v115_v5 = vld [vmem:[%s1132_s5 + $0x10] sm:$0xff]  ;;  %vm117_vm2 = vcmask 261120   ;;  %vm584_vm3 = vcmask 392192  }
   0x4   :  { %803 = vmatpush3.msra.mxu0 %v36_v0  ;;  %804 = vmatprep.mubr.msk.f32.mxu0 %vm920_vm1, %v919_v2  ;;  %v740_v6 = vld [vmem:[%s1132_s5 + $0x38] sm:$0xff]  ;;  %v114_v7 = vld [vmem:[%s1132_s5 + $0x8] sm:$0xff]  ;;  %v113_v8 = vld [vmem:[%s1132_s5] sm:$0xff] }
   0x5   :  { %792 = vmatpush3.msra.mxu1 %v116_v3  ;;  %807 = vmatprep.subr.mxu0 %v919_v2  ;;  %v739_v9 = vld [vmem:[%s1132_s5 + $0x30] sm:$0xff]  ;;  %v738_v10 = vld [vmem:[%s1132_s5 + $0x28] sm:$0xff]  ;;  %v737_v11 = vld [vmem:[%s1132_s5 + $0x20] sm:$0xff] }
   0x6   :  { %793 = vmatprep.subr.mxu1 %v919_v2  ;;  %799 = vmatprep.mubr.msk.f32.mxu1 %vm920_vm1, %v919_v2  ;;  %v742_v16 = vld [vmem:[%s1130_s3 + $0x10] sm:$0xff]  ;;  %v747_v17 = vld [vmem:[%s1132_s5 + $0x58] sm:$0xff]  ;;  %v745_v19 = vld [vmem:[%s1132_s5 + $0x48] sm:$0xff] }
   0x7   :  { %805 = vmatmul.mubr.msk.f32.vlgmr.msra.gmra.mxu0 %vm39_vm0, %v735_v4  ;;  %794 = vmatpush3.msra.mxu1 %v115_v5  ;;  %v746_v18 = vld [vmem:[%s1132_s5 + $0x50] sm:$0xff]  ;;  %v744_v20 = vld [vmem:[%s1132_s5 + $0x40] sm:$0xff]  ;;  %v510_v21 = vld [vmem:[%s1134_s7 + $0x18] sm:$0xff] }
   0x8   :  { %795 = vmatprep.subr.mxu1 %v919_v2  ;;  %808 = vmatpush3.msra.mxu0 %v740_v6  ;;  %v509_v22 = vld [vmem:[%s1134_s7 + $0x10] sm:$0xff]  ;;  %v37_v23 = vld [vmem:[%s1129_s2] sm:$0xff]  ;;  %v506_v30 = vld [vmem:[%s1133_s6 + $0x28] sm:$0xff] }
   0x9   :  { %796 = vmatpush3.msra.mxu1 %v114_v7  ;;  %809 = vmatprep.subr.mxu0 %v919_v2  ;;  %v505_v32 = vld [vmem:[%s1133_s6 + $0x20] sm:$0xff]  ;;  %v504_v34 = vld [vmem:[%s1133_s6 + $0x18] sm:$0xff]  ;;  %v503_v35 = vld [vmem:[%s1133_s6 + $0x10] sm:$0xff] }
   0xa   :  { %797 = vmatprep.subr.mxu1 %v919_v2  ;;  %815 = vmatprep.mubr.msk.f32.mxu0 %vm920_vm1, %v919_v2  ;;  %v502_v36 = vld [vmem:[%s1133_s6 + $0x8] sm:$0xff]  ;;  %v501_v38 = vld [vmem:[%s1133_s6] sm:$0xff] }
   0xb   :  { %798 = vmatpush3.msra.mxu1 %v113_v8  ;;  %810 = vmatpush3.msra.mxu0 %v739_v9  ;;  %v508_v37 = vld [vmem:[%s1134_s7 + $0x8] sm:$0xff]  ;;  %v500_v39 = vld [vmem:[%s1127_s0] sm:$0xff]  ;;  %s921_s0 = smov 32  }
   0xc   :  { %811 = vmatprep.subr.mxu0 %v919_v2  ;;  %823 = vmatprep.subr.mxu1 %v919_v2  ;;  %v507_v40 = vld [vmem:[%s1134_s7] sm:$0xff] }
   0xd   :  { %812 = vmatpush3.msra.mxu0 %v738_v10  ;;  %v751_v47 = vld [vmem:[%s1135_s8] ss:$0 sm:$0xff]  ;;  %s922_s8 = smov 96  }
   0xe   :  { %813 = vmatprep.subr.mxu0 %v919_v2  ;;  %v673_v52 = vld [vmem:[%s1128_s1] sm:$0xff]  ;;  %s923_s1 = smov [#allocation4]  }
   0xf   :  { %814 = vmatpush3.msra.mxu0 %v737_v11  ;;  %s721_s24 = sshll.u32 %s923_s1, 4  ;;  %s722_s24 = int_to_ptr.vmem [resolvable:$true] %s721_s24 }
  0x10   :  { %818 = vmatprep.subr.mxu0 %v919_v2  ;;  %s875_s25 = scalar_lea.vmem %s722_s24, 128  ;;  %p880_p1 = scmp.lt.s32.totalorder %s722_s24, %s722_s24 }
  0x11   :  { %p876_p0 = scmp.ne.s32.totalorder %s722_s24, %s875_s25  ;;  %p881_p2 = scmp.lt.s32.totalorder %s875_s25, %s875_s25 }
  0x13   :  { %p882_p3 = por %p881_p2, %p880_p1 }
  0x15   :  { %p883_p4 = pnand %p882_p3, %p876_p0 }
  0xc3   :  { %v109_v12 = vpop.f32.mrf.mxu0 }
  0xc4   :  { %800 = vmatmul.mubr.msk.f32.vlgmr.msra.gmra.mxu1 %vm117_vm2, %v109_v12 }
  0xc5   :  { %v790_v13 = vpop.f32.mrf.mxu0  ;;  %831 = vmatprep.mubr.msk.f32.mxu1 %vm920_vm1, %v919_v2  ;;  %824 = vmatpush3.msra.mxu1 %v747_v17 }
  0xc6   :  { %825 = vmatprep.subr.mxu1 %v919_v2 }
  0xc7   :  { %v263_v14 = vpop.f32.mrf.mxu0  ;;  %826 = vmatpush3.msra.mxu1 %v746_v18 }
  0xc8   :  { %816 = vmatmul.mubr.msk.f32.vlgmr.msra.gmra.mxu0 %vm117_vm2, %v263_v14  ;;  %827 = vmatprep.subr.mxu1 %v919_v2 }
  0xc9   :  { %v806_v15 = vpop.f32.mrf.mxu0  ;;  %819 = vmatpush3.msra.mxu0 %v36_v0  ;;  %820 = vmatprep.mubr.msk.f32.mxu0 %vm920_vm1, %v919_v2 }
  0xca   :  { %834 = vmatprep.subr.mxu0 %v919_v2  ;;  %828 = vmatpush3.msra.mxu1 %v745_v19 }
  0xcb   :  { %829 = vmatprep.subr.mxu1 %v919_v2 }
  0xcc   :  { %821 = vmatmul.mubr.msk.f32.vlgmr.msra.gmra.mxu0 %vm39_vm0, %v742_v16  ;;  %830 = vmatpush3.msra.mxu1 %v744_v20 }
  0xcd   :  { %842 = vmatprep.mubr.msk.f32.mxu0 %vm920_vm1, %v919_v2  ;;  %845 = vmatprep.subr.mxu1 %v919_v2 }
  0xce   :  { %835 = vmatpush3.msra.mxu0 %v510_v21 }
  0xcf   :  { %836 = vmatprep.subr.mxu0 %v919_v2 }
  0xd0   :  { %837 = vmatpush3.msra.mxu0 %v509_v22 }
  0xd1   :  { %838 = vmatprep.subr.mxu0 %v919_v2 }
  0xd2   :  { %839 = vmatpush3.msra.mxu0 %v508_v37 }
  0xd3   :  { %840 = vmatprep.subr.mxu0 %v919_v2 }
  0xd4   :  { %841 = vmatpush3.msra.mxu0 %v507_v40 }
 0x184   :  { %v187_v24 = vpop.f32.mrf.mxu1 }
 0x185   :  { %v191_v26 = vadd.f32 %v187_v24, %v37_v23 }
 0x186   :  { %v801_v25 = vpop.f32.mrf.mxu1 }
 0x188   :  { %v341_v27 = vpop.f32.mrf.mxu0 }
 0x189   :  { %v345_v28 = vadd.f32 %v341_v27, %v191_v26 }
 0x18a   :  { %v817_v29 = vpop.f32.mrf.mxu0 }
 0x18c   :  { %v417_v31 = vpop.f32.mrf.mxu0 }
 0x18d   :  { %832 = vmatmul.mubr.msk.f32.vlgmr.msra.gmra.mxu1 %vm117_vm2, %v417_v31 }
 0x18e   :  { %v822_v33 = vpop.f32.mrf.mxu0  ;;  %846 = vmatpush3.msra.mxu1 %v506_v30  ;;  %857 = vmatprep.mubr.msk.f32.mxu1 %vm920_vm1, %v919_v2 }
 0x18f   :  { %847 = vmatprep.subr.mxu1 %v919_v2 }
 0x190   :  { %848 = vmatpush3.msra.mxu1 %v505_v32 }
 0x191   :  { %849 = vmatprep.subr.mxu1 %v919_v2 }
 0x192   :  { %850 = vmatpush3.msra.mxu1 %v504_v34 }
 0x193   :  { %851 = vmatprep.subr.mxu1 %v919_v2 }
 0x194   :  { %852 = vmatpush3.msra.mxu1 %v503_v35 }
 0x195   :  { %853 = vmatprep.subr.mxu1 %v919_v2 }
 0x196   :  { %854 = vmatpush3.msra.mxu1 %v502_v36 }
 0x197   :  { %855 = vmatprep.subr.mxu1 %v919_v2 }
 0x198   :  { %856 = vmatpush3.msra.mxu1 %v501_v38 }
 0x199   :  { %858 = vmatmul.mubr.msk.f32.vlgmr.msra.gmra.mxu1 %vm584_vm3, %v500_v39 }
 0x24d   :  { %v495_v41 = vpop.f32.mrf.mxu1 }
 0x24e   :  { %v499_v42 = vadd.f32 %v495_v41, %v345_v28 }
 0x24f   :  { %v833_v43 = vpop.f32.mrf.mxu1 }
 0x250   :  { %843 = vmatmul.mubr.msk.f32.vlgmr.msra.gmra.mxu0 %vm117_vm2, %v499_v42 }
 0x259   :  { %v654_v44 = vpop.f32.mrf.mxu1 }
 0x25b   :  { %v859_v45 = vpop.f32.mrf.mxu1 }
 0x310   :  { %v580_v46 = vpop.f32.mrf.mxu0 }
 0x311   :  { %v655_v48 = vadd.f32 %v654_v44, %v580_v46 }
 0x312   :  { %v844_v49 = vpop.f32.mrf.mxu0 }
 0x313   :  { %v665_v50 = vadd.f32 %v751_v47, %v655_v48 }
 0x315   :  { %867 = vtanh.f32 %v665_v50  ;;  %v752_v53 = vmul.f32 -1.442695, %v665_v50 }
 0x317   :  { %869 = vpow2.f32 %v752_v53 }
 0x322   :  { %v868_v51 = vpop.eup %867 }
 0x323   :  { %680 = vrot.lane.b32.xlu0 %v868_v51, %s921_s0 }
 0x324   :  { %v870_v54 = vpop.eup %869 }
 0x325   :  { %v669_v55 = vadd.f32 1.0, %v870_v54 }
 0x327   :  { %675 = vrot.lane.b32.xlu0 %v673_v52, %s921_s0  ;;  %871 = vrcp.f32 %v669_v55 }
 0x334   :  { %v872_v56 = vpop.eup %871 }
 0x395   :  { %v681_v57 = vpop.permute.xlu0 %680 }
 0x396   :  { %v683_v58 = vmul.f32 %v872_v56, %v681_v57 }
 0x398   :  { %685 = vrot.lane.b32.xlu1 %v683_v58, %s921_s0 }
 0x399   :  { %v676_v59 = vpop.permute.xlu0 %675 }
 0x39a   :  { %v678_v60 = vmul.f32 %v872_v56, %v676_v59 }
 0x40a   :  { %v686_v61 = vpop.permute.xlu1 %685 }
 0x40b   :  { %v688_v62 = vadd.f32 %v686_v61, %v678_v60 }
 0x40d   :  { %873 = vtanh.f32 %v688_v62  ;;  %696 = vrot.lane.b32.xlu0 %v688_v62, %s922_s8 }
 0x41a   :  { %v874_v63 = vpop.eup %873 }
 0x41b   :  { %691 = vrot.lane.b32.xlu1 %v874_v63, %s921_s0 }
 0x47f   :  { %v697_v0 = vpop.permute.xlu0 %696 }
 0x480   :  { %699 = vst.msk [vmem:[#allocation4] sm:$0xff] %vm117_vm2, %v697_v0 }
 0x481   :  { %886 = shalt.err (!%p883_p4)
}
 0x482   :  { %724 = dma.vmem_to_hbm [thread:$0]  %s722_s24, 128, %s1137_s10, [#allocation5]  }
 0x483   :  { %s924_s5 = smov 64   ;;  %s925_s28 = smov [#allocation2]  }
 0x484   :  { %s711_s29 = sshll.u32 %s925_s28, 4  ;;  %s712_s29 = int_to_ptr.vmem [resolvable:$true] %s711_s29 }
 0x485   :  { %s895_s30 = scalar_lea.vmem %s712_s29, 128  ;;  %p900_p6 = scmp.lt.s32.totalorder %s712_s29, %s712_s29 }
 0x486   :  { %p896_p5 = scmp.ne.s32.totalorder %s712_s29, %s895_s30  ;;  %p901_p7 = scmp.lt.s32.totalorder %s895_s30, %s895_s30 }
 0x488   :  { %p902_p8 = por %p901_p7, %p900_p6 }
 0x48a   :  { %p903_p9 = pnand %p902_p8, %p896_p5 }
 0x48d   :  { %v692_v1 = vpop.permute.xlu1 %691 }
 0x48e   :  { %v694_v2 = vmul.f32 %v872_v56, %v692_v1 }
 0x490   :  { %701 = vrot.lane.b32.xlu1 %v694_v2, %s924_s5 }
 0x502   :  { %v702_v3 = vpop.permute.xlu1 %701 }
 0x503   :  { %704 = vst.msk [vmem:[#allocation2] sm:$0xff] %vm117_vm2, %v702_v3 }
 0x504   :  { %906 = shalt.err (!%p903_p9)
}
 0x505   :  { %714 = dma.vmem_to_hbm [thread:$0]  %s712_s29, 128, %s1136_s9, [#allocation3]  }
 0x506   :  { %915 = dma.done.wait [#allocation3], 128  }
 0x507   :  { %916 = vsyncadd [#allocation3], 4294967168 }
 0x508   :  { %917 = dma.done.wait [#allocation5], 128  }
 0x509   :  { %918 = vsyncadd [#allocation5], 4294967168 }
 0x50a   :  { %731 = vsyncpa [#allocation3], 1 }
 0x50b   :  { %732 = vsyncpa [#allocation5], 1 }

</bundles_post_ra>
